<compile_context>
chip_gen: v6e
topology: v6e:2x2x1
jax: 0.10.0
libtpu: 0.0.40
codegen_flags: <defaults>
</compile_context>

<pallas_src>
import functools
import numpy as np
import jax
import jax.numpy as jnp
from jax.experimental import pallas as pl
from jax.experimental.pallas import tpu as pltpu


def _attention_kernel(hidden_dim, num_edges, tb, persons, temperature,
                      temp_ref, spat_ref, slab_ref, out_ref):
    eps = 1e-5
    H, E, TB, P = hidden_dim, num_edges, tb, persons
    HE = H * E
    OUT_W = TB * H
    r1 = 16 + 2 * H                      # start row of the big constant matrices

    # ---- small parameter vectors (one 8-row slab block) ----------------------
    vec = slab_ref[0:8, :]               # (8, HE)
    gamma_rep = vec[0:1, :]              # gamma[k // E]  (spat-BN channel layout)
    beta_rep = vec[1:2, :]               # beta [k // E]
    gamma_h = vec[2:3, 0:H]              # (1, H)
    beta_h = vec[3:4, 0:H]               # (1, H)
    vb_tiled = vec[4:5, :]               # (1, HE): (b_t @ W_s)[k % H]
    c_bias = vec[5:6, :]                 # (1, HE): b_t . b_s in every lane

    # ---- BatchNorm1d(temp): two-pass batch stats per instance over P persons --
    temp3 = temp_ref[...].reshape(TB, P, H)                       # row r = t*P + p
    mu1 = jnp.mean(temp3, axis=1, keepdims=True)                  # (TB, 1, H)
    dt = temp3 - mu1
    var1 = jnp.mean(dt * dt, axis=1, keepdims=True)
    t_norm = (dt * jax.lax.rsqrt(var1 + eps)
              * gamma_h[None, :, :] + beta_h[None, :, :]).reshape(TB * P, H)

    # ---- BatchNorm1d(spat): per-channel two-pass stats over (P persons, E edges)
    spat3 = spat_ref[...].reshape(TB, P, HE)                      # lane k = (h=k//E, e=k%E)
    grp_e = slab_ref[r1:r1 + HE, :]                               # (HE, HE) channel-group sum
    inv_n = 1.0 / float(P * E)
    s1 = jnp.sum(spat3, axis=1)                                   # (TB, HE)
    mu2 = jnp.dot(s1, grp_e, preferred_element_type=jnp.float32) * inv_n
    d = spat3 - mu2[:, None, :]
    s2 = jnp.sum(d * d, axis=1)                                   # (TB, HE)
    var2 = jnp.dot(s2, grp_e, preferred_element_type=jnp.float32) * inv_n
    scale = gamma_rep * jax.lax.rsqrt(var2 + eps)                 # (TB, HE)
    # y_flat[r, k] == bn(spat)[t, p, k//E, k%E] == (bn(spat).view(P, E, H)) flattened.
    y_flat = (d * scale[:, None, :] + beta_rep[None, :, :]).reshape(TB * P, HE)

    # ---- fused temporal->spatial projection (host-fused Linear layers) --------
    # v_tiled[r, k] = v[r, k % H] where v = Linear_s_weight applied to Linear_t(t_norm)
    # cb[r, k]     = c[r]        where c = Linear_t(t_norm) . b_s
    v_tiled = jnp.dot(t_norm, slab_ref[16:16 + H, :],
                      preferred_element_type=jnp.float32) + vb_tiled        # (TB*P, HE)
    cb = jnp.dot(t_norm, slab_ref[16 + H:16 + 2 * H, :],
                 preferred_element_type=jnp.float32) + c_bias               # (TB*P, HE)

    # ---- attention logits expanded to lane width HE: lane k carries attn[r, k//H]
    attn = (jnp.dot(y_flat * v_tiled, slab_ref[r1 + HE:r1 + 2 * HE, :],
                    preferred_element_type=jnp.float32) + cb) * temperature  # (TB*P, HE)

    # ---- softmax over persons (dim 0 of each instance); identical lanes per edge group
    attn3 = attn.reshape(TB, P, HE)
    m = jnp.max(attn3, axis=1, keepdims=True)
    ex = jnp.exp(attn3 - m)
    denom = jnp.sum(ex, axis=1, keepdims=True)
    # exact reciprocal: approx=True is marginal here and risks the 1e-4 tolerance
    w_exp = (ex * pl.reciprocal(denom, approx=False)).reshape(TB * P, HE)

    # ---- H[t, p, h] = sum_e y[t, p, e, h] * w[t, p, e], produced lane-packed (P, TB*H)
    z = y_flat * w_exp                                                       # (TB*P, HE)
    out_wide = jnp.dot(z, slab_ref[r1 + 2 * HE:r1 + 3 * HE, 0:OUT_W],
                       preferred_element_type=jnp.float32)                   # (TB*P, OUT_W)
    lane_mask = slab_ref[8:16, :][0:TB, 0:OUT_W]                             # (TB, OUT_W)
    out_ref[...] = jnp.sum(out_wide.reshape(TB, P, OUT_W) * lane_mask[:, None, :],
                           axis=0)                                           # (P, OUT_W)


def _pick_tb(B, Hd, E):
    """Batch-tile size: divisor of B, <= min(E, 8); prefer lane-dense TB*Hd and grid >= 2."""
    cap = max(1, min(B, E, 8))
    cands = [t for t in range(1, cap + 1) if B % t == 0]
    multi = [t for t in cands if B // t >= 2]   # keep both v7x TensorCores busy if possible
    if multi:
        cands = multi
    return max(cands, key=lambda t: (((t * Hd) % 128) == 0, t))


def _pack_slab(params, hidden_dim, atten_dim, num_edges, tb):
    """One f32 slab (16 + 2H + 3*HE, HE): vectors, lane mask, fused weights, const matrices."""
    H, A, E, TB = hidden_dim, atten_dim, num_edges, tb
    HE = H * E
    OUT_W = TB * H
    assert H % 8 == 0, "slab row offsets assume hidden_dim % 8 == 0"
    assert TB <= E and TB <= 8 and OUT_W <= HE

    gamma = params["gamma"].astype(jnp.float32)
    beta = params["beta"].astype(jnp.float32)
    W_t = params["W_t"].astype(jnp.float32)      # (A, H)
    b_t = params["b_t"].astype(jnp.float32)      # (A,)
    W_s = params["W_s"].astype(jnp.float32)      # (A, H)
    b_s = params["b_s"].astype(jnp.float32)      # (A,)

    k = np.arange(HE)
    chan = k // E                 # spat-BN channel of flat lane k (original (H, E) layout)
    hmod = k % H                  # h' of lane k under the .view(P, E, H) reinterpretation
    edge = k // H                 # e' of lane k under the view
    cols = np.arange(OUT_W)

    # Exact fusion of the two Linear layers (matmul associativity):
    #   te = bn(temp) @ W_t.T + b_t ; v = te @ W_s ; c = te . b_s
    M = W_t.T @ W_s               # (H, H)
    vb = b_t @ W_s                # (H,)
    mc = W_t.T @ b_s              # (H,)
    c0 = jnp.dot(b_t, b_s)        # scalar

    # Host-built constant selection matrices (keeps iota/compare work out of the kernel).
    grp_e = (chan[:, None] == chan[None, :]).astype(np.float32)             # (HE, HE)
    grp_h = (edge[:, None] == edge[None, :]).astype(np.float32)             # (HE, HE)
    t_wide = np.zeros((HE, HE), np.float32)
    t_wide[:, :OUT_W] = (hmod[:, None] == (cols[None, :] % H)).astype(np.float32)
    lane_mask = np.zeros((8, HE), np.float32)
    lane_mask[:TB, :OUT_W] = ((cols[None, :] // H) == np.arange(TB)[:, None]).astype(np.float32)

    R = 16 + 2 * H + 3 * HE
    slab = jnp.zeros((R, HE), jnp.float32)
    slab = slab.at[0, :].set(gamma[chan])
    slab = slab.at[1, :].set(beta[chan])
    slab = slab.at[2, :H].set(gamma)
    slab = slab.at[3, :H].set(beta)
    slab = slab.at[4, :].set(vb[hmod])
    slab = slab.at[5, :].set(c0)
    slab = slab.at[8:16, :].set(jnp.asarray(lane_mask))
    slab = slab.at[16:16 + H, :].set(M[:, hmod])                            # M_tiled
    slab = slab.at[16 + H:16 + 2 * H, :].set(jnp.broadcast_to(mc[:, None], (H, HE)))
    r1 = 16 + 2 * H
    slab = slab.at[r1:r1 + HE, :].set(jnp.asarray(grp_e))
    slab = slab.at[r1 + HE:r1 + 2 * HE, :].set(jnp.asarray(grp_h))
    slab = slab.at[r1 + 2 * HE:r1 + 3 * HE, :].set(jnp.asarray(t_wide))
    return slab


def attention_forward_batched(temp_hidden, spat_hidden, params, atten_dim, tb=None):
    """temp_hidden: (B, P, H), spat_hidden: (B, P, H, E) -> (B, P, H)."""
    B, P, Hd = temp_hidden.shape
    E = spat_hidden.shape[-1]
    A = atten_dim
    HE = Hd * E
    temperature = float(E) / float(np.sqrt(A))

    if tb is None:
        tb = _pick_tb(B, Hd, E)
    assert B % tb == 0
    nb = B // tb
    out_w = tb * Hd

    # Glue (plain JAX): pure layout plumbing + parameter packing, no activation compute.
    # Instances are stacked along rows (sublanes) for the in-kernel matmul chain.
    # (temp is kept row-stacked rather than lane-packed: the 4 KiB input load is negligible
    #  and this avoids an in-kernel lane->sublane relayout before the projection matmul.)
    temp_rows = temp_hidden.astype(jnp.float32).reshape(nb, tb * P, Hd)
    spat_rows = spat_hidden.astype(jnp.float32).reshape(nb, tb * P, HE)
    slab = _pack_slab(params, Hd, A, E, tb)

    kernel = functools.partial(_attention_kernel, Hd, E, tb, P, temperature)

    out_packed = pl.pallas_call(
        kernel,
        out_shape=jax.ShapeDtypeStruct((nb, P, out_w), jnp.float32),
        grid=(nb,),
        in_specs=[
            pl.BlockSpec((None, tb * P, Hd), lambda b: (b, 0, 0)),
            pl.BlockSpec((None, tb * P, HE), lambda b: (b, 0, 0)),
            pl.BlockSpec(slab.shape, lambda b: (0, 0)),   # constant block: fetched once, reused
        ],
        out_specs=pl.BlockSpec((None, P, out_w), lambda b: (b, 0, 0)),
        compiler_params=pltpu.CompilerParams(
            dimension_semantics=("parallel",),            # independent steps -> megacore / v7x TCs
        ),
    )(temp_rows, spat_rows, slab)

    # un-pack the lane-packed output: (nb, P, tb*Hd) -> (B, P, Hd)
    out = out_packed.reshape(nb, P, tb, Hd).transpose(0, 2, 1, 3).reshape(B, P, Hd)
    return out


def attention_forward(temp_hidden, spat_hidden, params, atten_dim):
    """Single-instance forward matching the PyTorch module: (P,H),(P,H,E) -> (P,H)."""
    out = attention_forward_batched(temp_hidden[None], spat_hidden[None], params, atten_dim)
    return out[0]


def attention_reference(temp_hidden, spat_hidden, params, atten_dim):
    """Pure-JAX transliteration of the PyTorch forward (training-mode BN)."""
    eps = 1e-5
    gamma, beta, W_t, b_t, W_s, b_s = (params[k] for k in
                                       ("gamma", "beta", "W_t", "b_t", "W_s", "b_s"))
    P, Hd = temp_hidden.shape
    E = spat_hidden.shape[-1]
    A = atten_dim

    mu1 = temp_hidden.mean(0)
    var1 = ((temp_hidden - mu1) ** 2).mean(0)
    t_norm = (temp_hidden - mu1) / jnp.sqrt(var1 + eps) * gamma + beta
    temporal_embed = (t_norm @ W_t.T + b_t).reshape(P, A, 1)

    mu2 = spat_hidden.mean(axis=(0, 2))
    var2 = ((spat_hidden - mu2[None, :, None]) ** 2).mean(axis=(0, 2))
    spat_norm = ((spat_hidden - mu2[None, :, None]) / jnp.sqrt(var2 + eps)[None, :, None]
                 * gamma[None, :, None] + beta[None, :, None])
    y = spat_norm.reshape(P, E, Hd)                       # .view() semantics: raw reshape
    spatial_embed = y @ W_s.T + b_s                       # (P, E, A)
    attn = jnp.matmul(spatial_embed, temporal_embed)      # (P, E, 1)
    attn = attn * (E / np.sqrt(A))
    w = jax.nn.softmax(attn, axis=0)                      # softmax over persons
    Hout = jnp.matmul(jnp.transpose(y, (0, 2, 1)), w).reshape(P, Hd)
    return Hout


if __name__ == "__main__":
    # B instances, P persons, hidden, num_edges, atten_dim.
    # B=8 -> TB=4 instances per grid step (lane-dense 128-wide output) and grid=2
    # (both v7x TensorCores get work via dimension_semantics=("parallel",)).
    B, P, Hd, E, A = 8, 8, 32, 4, 16

    key = jax.random.PRNGKey(0)
    ks = jax.random.split(key, 8)
    temp_hidden = jax.random.normal(ks[0], (B, P, Hd), dtype=jnp.float32)
    spat_hidden = jax.random.normal(ks[1], (B, P, Hd, E), dtype=jnp.float32)

    params = {
        "gamma": 1.0 + 0.1 * jax.random.normal(ks[2], (Hd,), dtype=jnp.float32),
        "beta": 0.1 * jax.random.normal(ks[3], (Hd,), dtype=jnp.float32),
        "W_t": 0.1 * jax.random.normal(ks[4], (A, Hd), dtype=jnp.float32),
        "b_t": 0.1 * jax.random.normal(ks[5], (A,), dtype=jnp.float32),
        "W_s": 0.1 * jax.random.normal(ks[6], (A, Hd), dtype=jnp.float32),
        "b_s": 0.1 * jax.random.normal(ks[7], (A,), dtype=jnp.float32),
    }

    out = jax.block_until_ready(attention_forward_batched(temp_hidden, spat_hidden, params, A))
    for b in range(B):
        ref_b = attention_reference(temp_hidden[b], spat_hidden[b], params, A)
        np.testing.assert_allclose(np.asarray(out[b]), np.asarray(ref_b), rtol=1e-4, atol=1e-4)

    # single-instance wrapper (matches the PyTorch module signature)
    out1 = jax.block_until_ready(attention_forward(temp_hidden[0], spat_hidden[0], params, A))
    np.testing.assert_allclose(np.asarray(out1), np.asarray(out[0]), rtol=1e-4, atol=1e-4)

    print("KERNEL_OK")
</pallas_src>

<mosaic_0001>
module attributes {stable_mosaic.version = 11 : i64} {
  func.func @_attention_kernel(%arg0: i32, %arg1: memref<1x32x32xf32, #tpu.memory_space<vmem>>, %arg2: memref<1x32x128xf32, #tpu.memory_space<vmem>>, %arg3: memref<464x128xf32, #tpu.memory_space<vmem>>, %arg4: memref<1x8x128xf32, #tpu.memory_space<vmem>>) attributes {dimension_semantics = [#tpu.dimension_semantics<parallel>], iteration_bounds = array<i64: 2>, scalar_prefetch = 0 : i64, scratch_operands = 0 : i64, tpu.core_type = #tpu.core_type<tc>, window_params = [{transform_indices = @transform_0, window_bounds = array<i64: 1, 32, 32>}, {transform_indices = @transform_1, window_bounds = array<i64: 1, 32, 128>}, {pipeline_mode = #tpu.pipeline_mode<synchronous>, transform_indices = @transform_2, window_bounds = array<i64: 464, 128>}, {transform_indices = @transform_3, window_bounds = array<i64: 1, 8, 128>}]} {
    %c0 = arith.constant 0 : index
    %c0_0 = arith.constant 0 : index
    %0 = vector.load %arg3[%c0, %c0_0] : memref<464x128xf32, #tpu.memory_space<vmem>>, vector<8x128xf32>
    %1 = vector.extract_strided_slice %0 {offsets = [0, 0], sizes = [1, 128], strides = [1, 1]} : vector<8x128xf32> to vector<1x128xf32>
    %2 = vector.extract_strided_slice %0 {offsets = [1, 0], sizes = [1, 128], strides = [1, 1]} : vector<8x128xf32> to vector<1x128xf32>
    %3 = vector.extract_strided_slice %0 {offsets = [2, 0], sizes = [1, 32], strides = [1, 1]} : vector<8x128xf32> to vector<1x32xf32>
    %4 = vector.extract_strided_slice %0 {offsets = [3, 0], sizes = [1, 32], strides = [1, 1]} : vector<8x128xf32> to vector<1x32xf32>
    %5 = vector.extract_strided_slice %0 {offsets = [4, 0], sizes = [1, 128], strides = [1, 1]} : vector<8x128xf32> to vector<1x128xf32>
    %6 = vector.extract_strided_slice %0 {offsets = [5, 0], sizes = [1, 128], strides = [1, 1]} : vector<8x128xf32> to vector<1x128xf32>
    %c0_1 = arith.constant 0 : index
    %c0_2 = arith.constant 0 : index
    %c0_3 = arith.constant 0 : index
    %7 = vector.load %arg1[%c0_1, %c0_2, %c0_3] : memref<1x32x32xf32, #tpu.memory_space<vmem>>, vector<1x32x32xf32>
    %8 = vector.shape_cast %7 : vector<1x32x32xf32> to vector<32x32xf32>
    %9 = vector.shape_cast %8 : vector<32x32xf32> to vector<4x8x32xf32>
    %cst = arith.constant dense<0.000000e+00> : vector<4x32xf32>
    %10 = vector.multi_reduction <add>, %9, %cst [1] : vector<4x8x32xf32> to vector<4x32xf32>
    %11 = vector.shape_cast %10 : vector<4x32xf32> to vector<4x1x32xf32>
    %cst_4 = arith.constant 8.000000e+00 : f32
    %12 = vector.broadcast %cst_4 : f32 to vector<4x1x32xf32>
    %13 = arith.divf %11, %12 : vector<4x1x32xf32>
    %14 = vector.broadcast %13 : vector<4x1x32xf32> to vector<4x8x32xf32>
    %15 = arith.subf %9, %14 : vector<4x8x32xf32>
    %16 = arith.mulf %15, %15 : vector<4x8x32xf32>
    %cst_5 = arith.constant dense<0.000000e+00> : vector<4x32xf32>
    %17 = vector.multi_reduction <add>, %16, %cst_5 [1] : vector<4x8x32xf32> to vector<4x32xf32>
    %18 = vector.shape_cast %17 : vector<4x32xf32> to vector<4x1x32xf32>
    %cst_6 = arith.constant 8.000000e+00 : f32
    %19 = vector.broadcast %cst_6 : f32 to vector<4x1x32xf32>
    %20 = arith.divf %18, %19 : vector<4x1x32xf32>
    %cst_7 = arith.constant 9.99999974E-6 : f32
    %21 = vector.broadcast %cst_7 : f32 to vector<4x1x32xf32>
    %22 = arith.addf %20, %21 : vector<4x1x32xf32>
    %23 = math.rsqrt %22 : vector<4x1x32xf32>
    %24 = vector.broadcast %23 : vector<4x1x32xf32> to vector<4x8x32xf32>
    %25 = arith.mulf %15, %24 : vector<4x8x32xf32>
    %26 = vector.shape_cast %3 : vector<1x32xf32> to vector<1x1x32xf32>
    %27 = vector.broadcast %26 : vector<1x1x32xf32> to vector<4x8x32xf32>
    %28 = arith.mulf %25, %27 : vector<4x8x32xf32>
    %29 = vector.shape_cast %4 : vector<1x32xf32> to vector<1x1x32xf32>
    %30 = vector.broadcast %29 : vector<1x1x32xf32> to vector<4x8x32xf32>
    %31 = arith.addf %28, %30 : vector<4x8x32xf32>
    %32 = vector.shape_cast %31 : vector<4x8x32xf32> to vector<32x32xf32>
    %c0_8 = arith.constant 0 : index
    %c0_9 = arith.constant 0 : index
    %c0_10 = arith.constant 0 : index
    %33 = vector.load %arg2[%c0_8, %c0_9, %c0_10] : memref<1x32x128xf32, #tpu.memory_space<vmem>>, vector<1x32x128xf32>
    %34 = vector.shape_cast %33 : vector<1x32x128xf32> to vector<32x128xf32>
    %35 = vector.shape_cast %34 : vector<32x128xf32> to vector<4x8x128xf32>
    %c80 = arith.constant 80 : index
    %c0_11 = arith.constant 0 : index
    %36 = vector.load %arg3[%c80, %c0_11] : memref<464x128xf32, #tpu.memory_space<vmem>>, vector<128x128xf32>
    %cst_12 = arith.constant dense<0.000000e+00> : vector<4x128xf32>
    %37 = vector.multi_reduction <add>, %35, %cst_12 [1] : vector<4x8x128xf32> to vector<4x128xf32>
    %cst_13 = arith.constant dense<0.000000e+00> : vector<4x128xf32>
    %38 = tpu.matmul %37, %36, %cst_13 {dimension_numbers = #tpu.dot_dimension_numbers<[1], [0], [0], [1], [0, 0, 1, 1], [], []>} : vector<4x128xf32>, vector<128x128xf32>, vector<4x128xf32> -> vector<4x128xf32>
    %cst_14 = arith.constant 3.125000e-02 : f32
    %39 = vector.broadcast %cst_14 : f32 to vector<4x128xf32>
    %40 = arith.mulf %38, %39 : vector<4x128xf32>
    %41 = vector.shape_cast %40 : vector<4x128xf32> to vector<4x1x128xf32>
    %42 = vector.broadcast %41 : vector<4x1x128xf32> to vector<4x8x128xf32>
    %43 = arith.subf %35, %42 : vector<4x8x128xf32>
    %44 = arith.mulf %43, %43 : vector<4x8x128xf32>
    %cst_15 = arith.constant dense<0.000000e+00> : vector<4x128xf32>
    %45 = vector.multi_reduction <add>, %44, %cst_15 [1] : vector<4x8x128xf32> to vector<4x128xf32>
    %cst_16 = arith.constant dense<0.000000e+00> : vector<4x128xf32>
    %46 = tpu.matmul %45, %36, %cst_16 {dimension_numbers = #tpu.dot_dimension_numbers<[1], [0], [0], [1], [0, 0, 1, 1], [], []>} : vector<4x128xf32>, vector<128x128xf32>, vector<4x128xf32> -> vector<4x128xf32>
    %cst_17 = arith.constant 3.125000e-02 : f32
    %47 = vector.broadcast %cst_17 : f32 to vector<4x128xf32>
    %48 = arith.mulf %46, %47 : vector<4x128xf32>
    %cst_18 = arith.constant 9.99999974E-6 : f32
    %49 = vector.broadcast %cst_18 : f32 to vector<4x128xf32>
    %50 = arith.addf %48, %49 : vector<4x128xf32>
    %51 = math.rsqrt %50 : vector<4x128xf32>
    %52 = vector.broadcast %1 : vector<1x128xf32> to vector<4x128xf32>
    %53 = arith.mulf %52, %51 : vector<4x128xf32>
    %54 = vector.shape_cast %53 : vector<4x128xf32> to vector<4x1x128xf32>
    %55 = vector.broadcast %54 : vector<4x1x128xf32> to vector<4x8x128xf32>
    %56 = arith.mulf %43, %55 : vector<4x8x128xf32>
    %57 = vector.shape_cast %2 : vector<1x128xf32> to vector<1x1x128xf32>
    %58 = vector.broadcast %57 : vector<1x1x128xf32> to vector<4x8x128xf32>
    %59 = arith.addf %56, %58 : vector<4x8x128xf32>
    %60 = vector.shape_cast %59 : vector<4x8x128xf32> to vector<32x128xf32>
    %c16 = arith.constant 16 : index
    %c0_19 = arith.constant 0 : index
    %61 = vector.load %arg3[%c16, %c0_19] : memref<464x128xf32, #tpu.memory_space<vmem>>, vector<32x128xf32>
    %cst_20 = arith.constant dense<0.000000e+00> : vector<32x128xf32>
    %62 = tpu.matmul %32, %61, %cst_20 {dimension_numbers = #tpu.dot_dimension_numbers<[1], [0], [0], [1], [0, 0, 1, 1], [], []>} : vector<32x32xf32>, vector<32x128xf32>, vector<32x128xf32> -> vector<32x128xf32>
    %63 = vector.broadcast %5 : vector<1x128xf32> to vector<32x128xf32>
    %64 = arith.addf %62, %63 : vector<32x128xf32>
    %c48 = arith.constant 48 : index
    %c0_21 = arith.constant 0 : index
    %65 = vector.load %arg3[%c48, %c0_21] : memref<464x128xf32, #tpu.memory_space<vmem>>, vector<32x128xf32>
    %cst_22 = arith.constant dense<0.000000e+00> : vector<32x128xf32>
    %66 = tpu.matmul %32, %65, %cst_22 {dimension_numbers = #tpu.dot_dimension_numbers<[1], [0], [0], [1], [0, 0, 1, 1], [], []>} : vector<32x32xf32>, vector<32x128xf32>, vector<32x128xf32> -> vector<32x128xf32>
    %67 = vector.broadcast %6 : vector<1x128xf32> to vector<32x128xf32>
    %68 = arith.addf %66, %67 : vector<32x128xf32>
    %69 = arith.mulf %60, %64 : vector<32x128xf32>
    %c208 = arith.constant 208 : index
    %c0_23 = arith.constant 0 : index
    %70 = vector.load %arg3[%c208, %c0_23] : memref<464x128xf32, #tpu.memory_space<vmem>>, vector<128x128xf32>
    %cst_24 = arith.constant dense<0.000000e+00> : vector<32x128xf32>
    %71 = tpu.matmul %69, %70, %cst_24 {dimension_numbers = #tpu.dot_dimension_numbers<[1], [0], [0], [1], [0, 0, 1, 1], [], []>} : vector<32x128xf32>, vector<128x128xf32>, vector<32x128xf32> -> vector<32x128xf32>
    %72 = arith.addf %71, %68 : vector<32x128xf32>
    %cst_25 = arith.constant 1.000000e+00 : f32
    %73 = vector.broadcast %cst_25 : f32 to vector<32x128xf32>
    %74 = arith.mulf %72, %73 : vector<32x128xf32>
    %75 = vector.shape_cast %74 : vector<32x128xf32> to vector<4x8x128xf32>
    %cst_26 = arith.constant dense<0xFF800000> : vector<4x128xf32>
    %76 = vector.multi_reduction <maximumf>, %75, %cst_26 [1] : vector<4x8x128xf32> to vector<4x128xf32>
    %77 = vector.shape_cast %76 : vector<4x128xf32> to vector<4x1x128xf32>
    %78 = vector.broadcast %77 : vector<4x1x128xf32> to vector<4x8x128xf32>
    %79 = arith.subf %75, %78 : vector<4x8x128xf32>
    %80 = math.exp %79 : vector<4x8x128xf32>
    %cst_27 = arith.constant dense<0.000000e+00> : vector<4x128xf32>
    %81 = vector.multi_reduction <add>, %80, %cst_27 [1] : vector<4x8x128xf32> to vector<4x128xf32>
    %82 = vector.shape_cast %81 : vector<4x128xf32> to vector<4x1x128xf32>
    %83 = tpu.reciprocal %82 : vector<4x1x128xf32> -> vector<4x1x128xf32>
    %84 = vector.broadcast %83 : vector<4x1x128xf32> to vector<4x8x128xf32>
    %85 = arith.mulf %80, %84 : vector<4x8x128xf32>
    %86 = vector.shape_cast %85 : vector<4x8x128xf32> to vector<32x128xf32>
    %87 = arith.mulf %60, %86 : vector<32x128xf32>
    %c336 = arith.constant 336 : index
    %c0_28 = arith.constant 0 : index
    %88 = vector.load %arg3[%c336, %c0_28] : memref<464x128xf32, #tpu.memory_space<vmem>>, vector<128x128xf32>
    %cst_29 = arith.constant dense<0.000000e+00> : vector<32x128xf32>
    %89 = tpu.matmul %87, %88, %cst_29 {dimension_numbers = #tpu.dot_dimension_numbers<[1], [0], [0], [1], [0, 0, 1, 1], [], []>} : vector<32x128xf32>, vector<128x128xf32>, vector<32x128xf32> -> vector<32x128xf32>
    %c8 = arith.constant 8 : index
    %c0_30 = arith.constant 0 : index
    %90 = vector.load %arg3[%c8, %c0_30] : memref<464x128xf32, #tpu.memory_space<vmem>>, vector<8x128xf32>
    %91 = vector.extract_strided_slice %90 {offsets = [0, 0], sizes = [4, 128], strides = [1, 1]} : vector<8x128xf32> to vector<4x128xf32>
    %92 = vector.shape_cast %89 : vector<32x128xf32> to vector<4x8x128xf32>
    %93 = vector.shape_cast %91 : vector<4x128xf32> to vector<4x1x128xf32>
    %94 = vector.broadcast %93 : vector<4x1x128xf32> to vector<4x8x128xf32>
    %95 = arith.mulf %92, %94 : vector<4x8x128xf32>
    %cst_31 = arith.constant dense<0.000000e+00> : vector<8x128xf32>
    %96 = vector.multi_reduction <add>, %95, %cst_31 [0] : vector<4x8x128xf32> to vector<8x128xf32>
    %c0_32 = arith.constant 0 : index
    %c0_33 = arith.constant 0 : index
    %c0_34 = arith.constant 0 : index
    %97 = vector.load %arg4[%c0_32, %c0_33, %c0_34] : memref<1x8x128xf32, #tpu.memory_space<vmem>>, vector<1x8x128xf32>
    %98 = vector.shape_cast %97 : vector<1x8x128xf32> to vector<8x128xf32>
    %99 = vector.shape_cast %96 : vector<8x128xf32> to vector<1x8x128xf32>
    tpu.vector_store %arg4[%c0_32, %c0_33, %c0_34], %99 {strides = array<i32>} : memref<1x8x128xf32, #tpu.memory_space<vmem>>, vector<1x8x128xf32>,
    return
  }
  func.func @transform_0(%arg0: i32) -> (i32, i32, i32) {
    %c0_i32 = arith.constant 0 : i32
    %c0_i32_0 = arith.constant 0 : i32
    %c0_i32_1 = arith.constant 0 : i32
    return %arg0, %c0_i32, %c0_i32_0 : i32, i32, i32
  }
  func.func @transform_1(%arg0: i32) -> (i32, i32, i32) {
    %c0_i32 = arith.constant 0 : i32
    %c0_i32_0 = arith.constant 0 : i32
    %c0_i32_1 = arith.constant 0 : i32
    return %arg0, %c0_i32, %c0_i32_0 : i32, i32, i32
  }
  func.func @transform_2(%arg0: i32) -> (i32, i32) {
    %c0_i32 = arith.constant 0 : i32
    %c0_i32_0 = arith.constant 0 : i32
    %c0_i32_1 = arith.constant 0 : i32
    return %c0_i32, %c0_i32_0 : i32, i32
  }
  func.func @transform_3(%arg0: i32) -> (i32, i32, i32) {
    %c0_i32 = arith.constant 0 : i32
    %c0_i32_0 = arith.constant 0 : i32
    %c0_i32_1 = arith.constant 0 : i32
    return %arg0, %c0_i32, %c0_i32_0 : i32, i32, i32
  }
}

</mosaic_0001>

<bundles_post_ra>
// kernel: tpu_custom_call.1
= control target key start
LH: loop header
LB: loop body
LE: loop exit
PB: predicated region body
PF: predicated region fallthrough
CT: control target
= control target key end

     0   :  { %s2328_s0 = inlined_call_operand.hbm [shape: f32[2,32,32], index: 0, kind: input, shape index: {}]   ;;  %s2329_s1 = inlined_call_operand.hbm [shape: f32[2,32,128], index: 1, kind: input, shape index: {}]   ;;  %s2330_s2 = inlined_call_operand.hbm [shape: f32[464,128], index: 2, kind: input, shape index: {}]   ;;  %s2331_s3 = inlined_call_operand.hbm [shape: f32[2,8,128], index: 3, kind: output, shape index: {}]  }
   0x1   :  { %2339 = sst [smem:[#allocation13_spill]] %s2328_s0 }
   0x2   :  { %2340 = sst [smem:[#allocation14_spill]] %s2330_s2 }
   0x3   :  { %8 = vsyncpa [#allocation3], 0 }
   0x4   :  { %10 = vsyncpa [#allocation3 + $0x1], 0 }
   0x5   :  { %11 = vsyncpa [#allocation6], 0 }
   0x6   :  { %13 = vsyncpa [#allocation6 + $0x1], 0 }
   0x7   :  { %14 = vsyncpa [#allocation4], 0 }
   0x8   :  { %16 = vsyncpa [#allocation4 + $0x1], 0  ;;  %s1914_s12 = smov 0   ;;  %s1916_s13 = smov 0  }
   0x9   :  { %s1918_s14 = smov 0   ;;  %s1920_s15 = smov 0  }
   0xa LB: > { %s1935_s16 = sadd.s32 4294967295, %s1883_s15   ;;  %s1342_s17 = sadd.s32 4294967294, %s1883_s15   ;;  %s1883_s15 = sphi %s1920_s15, %s2361_s15   ;;  %s1879_s14 = sphi %s1918_s14, %s2360_s14   ;;  %s1875_s13 = sphi %s1916_s13, %s2359_s13   ;;  %s1871_s12 = sphi %s1914_s12, %s2358_s12  }
   0xb   : > { %p42_p0 = scmp.ne.s32.totalorder %s1875_s13, %s1871_s12  ;;  %p2336_p1 = scmp.eq.s32.totalorder %s1935_s16, 0 }
   0xc   : > { %p119_p3 = scmp.eq.s32.totalorder %s1342_s17, 1  ;;  %p1343_p5 = scmp.ge.s32.totalorder %s1883_s15, 1 }
   0xd   : > { %p1944_p4 = por %p2336_p1, %p42_p0  ;;  %p126_p7 = scmp.lt.s32.totalorder %s1883_s15, 3 }
   0xe   : > { %p1949_p6 = por %p119_p3, %p42_p0  ;;  %s1885_s21 = smov [#allocation7]  }
   0xf   : > { %s2341_s18 = scalar_select %p1944_p4, 1, 0 }
  0x10   : > { %s2342_s19 = scalar_select %p1949_p6, 1, 0 }
  0x11   : > { %p1954_p8 = pnand %p1343_p5, %p126_p7  ;;  %s138_s22 = sshll.u32 %s1885_s21, 4  ;;  %s139_s22 = int_to_ptr.vmem [resolvable:$true] %s138_s22 }
  0x12   : > { %s1968_s24 = sadd.s32 1, %s1883_s15   ;;  %s29_s25 = sadd.s32 1, %s1879_s14 }
  0x13   : > { %p1646_p9 = pneg %p1954_p8  ;;  %s26_s26 = ssub.s32 %s1883_s15, %s1968_s24 }
  0x14   : > { %s1740_s27 = scalar_lea.vmem %s139_s22, 7424  ;;  %p1748_p5 = scmp.lt.s32.totalorder %s139_s22, %s139_s22 }
  0x15   : > { %p1963_p11 = pnand %p1646_p9, %p2336_p1  ;;  %p1741_p13 = scmp.ne.s32.totalorder %s139_s22, %s1740_s27 }
  0x16   : > { %p1749_p7 = scmp.lt.s32.totalorder %s1740_s27, %s1740_s27 }
  0x17   : > { %p1731_p12 = pneg %p1963_p11 }
  0x18   : > { %p1750_p10 = por %p1749_p7, %p1748_p5 }
  0x19   : > { %p1743_p0 = pnand %p1741_p13, %p1731_p12 }
  0x1b   : > { %p1744_p3 = pneg %p1743_p0 }
  0x1d   : > { %p1751_p2 = pnand %p1750_p10, %p1744_p3 }
  0x1f   : > { %1754 = shalt.err (!%p1751_p2)
}
  0x20   : > { %s2332_s28 = smov 128   ;;  %s2334_s29 = smov 8  }
  0x21   : > { %s2345_s2 = sld [smem:[#allocation14_spill]]  ;;  %p27_p2 = scmp.eq.s32.totalorder %s26_s26, 0 }
  0x22   : > { %p36_p9 = scmp.ne.s32.totalorder %s1879_s14, %s1875_s13  ;;  %p37_p10 = scmp.eq.s32.totalorder %s1883_s15, 0 }
  0x23   : > { %p1662_p12 = scmp.lt.s32.totalorder %s1883_s15, 2  ;;  %p2346_p0 = scmp.eq.s32.totalorder %s1935_s16, 1 }
  0x24   : > { %s1988_s5 = scalar_select %p27_p2, %s1879_s14, %s29_s25  }
  0x25   : > { %p38_p13 = por %p37_p10, %p36_p9  ;;  %p1992_p3 = por %p2346_p0, %p36_p9 }
  0x26   : > { %s152_s7 = sand.u32 1, %s1879_s14   ;;  %s1370_s8 = sshll.u32 %s1883_s15, 9 }
  0x27   : > { %1649 = dma.hbm_to_vmem [thread:$0]  (!%p1963_p11), %s2345_s2, 7424, %s139_s22, [#allocation6], %s2332_s28, %s2332_s28, %s2334_s29  }
  0x28   : > { %s2347_s6 = scalar_select %p1992_p3, 1, 0 }
  0x29   : > { %s1998_s9 = sshll.u32 %s152_s7, 5  ;;  %s2348_s0 = sld [smem:[#allocation13_spill]] }
  0x2a   : > { %s156_s21 = scalar_lea.vmem [#allocation2], %s1998_s9  ;;  %p2006_p11 = pnand %p1662_p12, %p38_p13 }
  0x2b   : > { %s163_s22 = sshll.u32 %s156_s21, 4  ;;  %s2015_s27 = scalar_lea.hbm %s2329_s1, %s1370_s8  ;;  %s2010_s22 = int_to_ptr.vmem [resolvable:$true] %s163_s22 }
  0x2c   : > { %s2017_s30 = scalar_lea.sflag [#allocation3], %s152_s7  ;;  %p1757_p7 = pneg %p2006_p11 }
  0x2f   : > { %s2003_s17 = scalar_lea.hbm %s2348_s0, %s1370_s8  ;;  %s1760_s21 = scalar_lea.hbm %s2348_s0, 1024 }
  0x30   : > { %s1755_s4 = scalar_lea.hbm %s2003_s17, 512  ;;  %p1761_p10 = scmp.lt.s32.totalorder %s2003_s17, %s2348_s0 }
  0x31   : > { %p1756_p5 = scmp.ne.s32.totalorder %s2003_s17, %s1755_s4  ;;  %p1762_p12 = scmp.lt.s32.totalorder %s1760_s21, %s1755_s4 }
  0x33   : > { %p1758_p2 = pnand %p1757_p7, %p1756_p5  ;;  %p1763_p13 = por %p1762_p12, %p1761_p10 }
  0x35   : > { %p1759_p9 = pneg %p1758_p2 }
  0x37   : > { %p1764_p0 = pnand %p1763_p13, %p1759_p9 }
  0x39   : > { %1767 = shalt.err (!%p1764_p0)
}
  0x3a   : > { %s1768_s7 = scalar_lea.vmem %s2010_s22, 512  ;;  %s1888_s8 = smov [#allocation2]  }
  0x3b   : > { %p1769_p1 = scmp.ne.s32.totalorder %s2010_s22, %s1768_s7  ;;  %s1773_s25 = sshll.u32 %s1888_s8, 4  ;;  %s1774_s25 = int_to_ptr.vmem [resolvable:$false] %s1773_s25 }
  0x3c   : > { %s1775_s26 = scalar_lea.vmem %s1774_s25, 1024  ;;  %p1776_p6 = scmp.lt.s32.totalorder %s2010_s22, %s1774_s25 }
  0x3d   : > { %p1771_p5 = pnand %p1769_p1, %p1757_p7  ;;  %p1777_p3 = scmp.lt.s32.totalorder %s1775_s26, %s1768_s7 }
  0x3f   : > { %p1772_p2 = pneg %p1771_p5  ;;  %p1778_p4 = por %p1777_p3, %p1776_p6 }
  0x41   : > { %p1779_p10 = pnand %p1778_p4, %p1772_p2 }
  0x43   : > { %1782 = shalt.err (!%p1779_p10)
}
  0x44   : > { %s2350_s28 = smov 8   ;;  %s2351_s29 = smov 128  }
  0x45   : > { %1653 = dma.hbm_to_vmem [thread:$0]  (!%p2006_p11), %s2003_s17, 512, %s2010_s22, %s2017_s30, %s2351_s29, %s2351_s29, %s2350_s28  }
  0x46   : > { %s177_s4 = scalar_lea.vmem [#allocation5], %s1998_s9  ;;  %s173_s11 = sand.u32 1, %s1883_s15  }
  0x47   : > { %s184_s10 = sshll.u32 %s177_s4, 4  ;;  %s174_s21 = scalar_lea.sflag [#allocation6], %s173_s11  ;;  %s2049_s10 = int_to_ptr.vmem [resolvable:$true] %s184_s10 }
  0x48   : > { %s1783_s7 = scalar_lea.hbm %s2015_s27, 512  ;;  %s1788_s26 = scalar_lea.hbm %s2329_s1, 1024 }
  0x49   : > { %p1784_p1 = scmp.ne.s32.totalorder %s2015_s27, %s1783_s7  ;;  %p1789_p3 = scmp.lt.s32.totalorder %s2015_s27, %s2329_s1 }
  0x4a   : > { %p1790_p9 = scmp.lt.s32.totalorder %s1788_s26, %s1783_s7 }
  0x4b   : > { %p1786_p4 = pnand %p1784_p1, %p1757_p7 }
  0x4c   : > { %p1791_p12 = por %p1790_p9, %p1789_p3 }
  0x4d   : > { %p1787_p6 = pneg %p1786_p4 }
  0x4f   : > { %p1792_p13 = pnand %p1791_p12, %p1787_p6 }
  0x51   : > { %1795 = shalt.err (!%p1792_p13)
}
  0x52   : > { %s1796_s9 = scalar_lea.vmem %s2049_s10, 512  ;;  %s1889_s17 = smov [#allocation5]  }
  0x53   : > { %p1797_p0 = scmp.ne.s32.totalorder %s2049_s10, %s1796_s9  ;;  %s1801_s22 = sshll.u32 %s1889_s17, 4  ;;  %s1802_s22 = int_to_ptr.vmem [resolvable:$false] %s1801_s22 }
  0x54   : > { %s1803_s30 = scalar_lea.vmem %s1802_s22, 1024  ;;  %p1804_p10 = scmp.lt.s32.totalorder %s2049_s10, %s1802_s22 }
  0x55   : > { %p1799_p5 = pnand %p1797_p0, %p1757_p7  ;;  %p1805_p1 = scmp.lt.s32.totalorder %s1803_s30, %s1796_s9 }
  0x57   : > { %p1800_p2 = pneg %p1799_p5  ;;  %p1806_p4 = por %p1805_p1, %p1804_p10 }
  0x59   : > { %p1807_p3 = pnand %p1806_p4, %p1800_p2 }
  0x5b   : > { %1810 = shalt.err (!%p1807_p3)
}
  0x5c   : > { %1656 = dma.hbm_to_vmem [thread:$0]  (!%p2006_p11), %s2015_s27, 512, %s2049_s10, %s174_s21, %s2351_s29, %s2351_s29, %s2350_s28  }
  0x5d   : > { %196 = sbr.rel (%p1954_p8) target bundleno = 1064 (0x428), region = 32  ;;  %s2079_s0 = sand.u32 (!%p1954_p8), 1, %s1875_s13  }
  0x5e   : > { %s1353_s2 = sshll.u32 (!%p1954_p8), %s2079_s0, 5  ;;  %s199_s4 = scalar_lea.sflag (!%p1954_p8), [#allocation3], %s2079_s0 }
  0x5f   : > { %s2083_s11 = scalar_lea.vmem (!%p1954_p8), [#allocation2], %s1353_s2  ;;  %p2352_p7 = scmp.ne.s32.totalorder (!%p1954_p8), %s2341_s18, 0 }
  0x62   : > { %1854 = dma.done.wait (%p2352_p7), %s199_s4, 512  }
  0x63   : > { %1856 = vsyncadd (%p2352_p7), %s199_s4, 4294966784  ;;  %s207_s23 = sand.u32 1, %s1935_s16   ;;  %s211_s27 = scalar_lea.vmem [#allocation5], %s1353_s2 }
  0x64   : > { %s208_s20 = scalar_lea.sflag [#allocation6], %s207_s23 }
  0x65   : > { %1858 = dma.done.wait (%p2352_p7), %s208_s20, 512  }
  0x66   : > { %1860 = vsyncadd (%p2352_p7), %s208_s20, 4294966784  ;;  %p2353_p8 = scmp.eq.s32.totalorder %s1935_s16, 0 }
  0x68   : > { %1862 = dma.done.wait (%p2353_p8), [#allocation6], 7424   ;;  %p2354_p11 = pmov %p2353_p8 }
  0x69   : > { %v1890_v0 = vmov 0.0   ;;  %vm1891_vm0 = vmmov 0   ;;  %v369_v1 = vld [vmem:[#allocation7 + $0xc8] sm:$0xff]  ;;  %v368_v2 = vld [vmem:[#allocation7 + $0xc0] sm:$0xff]  ;;  %v367_v3 = vld [vmem:[#allocation7 + $0xb8] sm:$0xff]  ;;  %vm398_vm1 = vcmask 1041409  }
  0x6a   : > { %1864 = vsyncadd (%p2354_p11), [#allocation6], 4294959872  ;;  %1462 = vmatprep.subr.mxu0 %v1890_v0  ;;  %1494 = vmatprep.mubr.msk.f32.mxu0 %vm1891_vm0, %v1890_v0  ;;  %v366_v4 = vld [vmem:[#allocation7 + $0xb0] sm:$0xff]  ;;  %v2106_v5 = vld [vmem:[%s211_s27] sm:$0xff]  ;;  %vm400_vm2 = vcmask 1042434   ;;  %vm402_vm3 = vcmask 1043459  }
  0x6b   : > { %1497 = vmatprep.subr.mxu1 %v1890_v0  ;;  %1529 = vmatprep.mubr.msk.f32.mxu1 %vm1891_vm0, %v1890_v0  ;;  %v2108_v6 = vld [vmem:[%s211_s27 + $0x8] sm:$0xff]  ;;  %v2111_v8 = vld [vmem:[%s211_s27 + $0x10] sm:$0xff]  ;;  %v2113_v9 = vld [vmem:[%s211_s27 + $0x18] sm:$0xff]  ;;  %v370_v10 = vrot.slane %v2106_v5, 4  ;;  %vm248_vm4 = vcmask 261120   ;;  %s1356_s18 = sshll.u32 %s2079_s0, 3 }
  0x6c   : > { %1463 = vmatpush3.msra.mxu0 %v369_v1  ;;  %1498 = vmatpush3.msra.mxu1 %v369_v1  ;;  %v365_v7 = vld [vmem:[#allocation7 + $0xa8] sm:$0xff]  ;;  %v376_v11 = vrot.slane %v2108_v6, 4  ;;  %v382_v12 = vrot.slane %v2111_v8, 4  ;;  %v388_v13 = vrot.slane %v2113_v9, 4  ;;  %v364_v14 = vld [vmem:[#allocation7 + $0xa0] sm:$0xff]  ;;  %v363_v19 = vld [vmem:[#allocation7 + $0x98] sm:$0xff] }
  0x6d   : > { %1464 = vmatprep.subr.mxu0 %v1890_v0  ;;  %1499 = vmatprep.subr.mxu1 %v1890_v0  ;;  %v371_v15 = vadd.f32 %v370_v10, %v2106_v5  ;;  %v362_v23 = vld [vmem:[#allocation7 + $0x90] sm:$0xff]  ;;  %v361_v27 = vld [vmem:[#allocation7 + $0x88] sm:$0xff]  ;;  %v360_v31 = vld [vmem:[#allocation7 + $0x80] sm:$0xff]  ;;  %s1367_s28 = sshll.u32 %s1935_s16, 7  ;;  %s242_s29 = scalar_lea.vmem [#allocation8], %s1356_s18 }
  0x6e   : > { %1465 = vmatpush3.msra.mxu0 %v368_v2  ;;  %1500 = vmatpush3.msra.mxu1 %v368_v2  ;;  %v377_v16 = vadd.f32 %v376_v11, %v2108_v6  ;;  %v383_v17 = vadd.f32 %v382_v12, %v2111_v8  ;;  %v389_v18 = vadd.f32 %v388_v13, %v2113_v9  ;;  %v359_v33 = vld [vmem:[#allocation7 + $0x78] sm:$0xff]  ;;  %v358_v37 = vld [vmem:[#allocation7 + $0x70] sm:$0xff]  ;;  %v357_v39 = vld [vmem:[#allocation7 + $0x68] sm:$0xff]  ;;  %s1240_s10 = sshll.u32 %s242_s29, 4  ;;  %s1238_s8 = scalar_lea.hbm %s2331_s3, %s1367_s28  ;;  %s1241_s10 = int_to_ptr.vmem [resolvable:$true] %s1240_s10 }
  0x6f   : > { %1466 = vmatprep.subr.mxu0 %v1890_v0  ;;  %1501 = vmatprep.subr.mxu1 %v1890_v0  ;;  %v372_v20 = vrot.slane %v371_v15, 2  ;;  %v356_v42 = vld [vmem:[#allocation7 + $0x60] sm:$0xff]  ;;  %v355_v44 = vld [vmem:[#allocation7 + $0x58] sm:$0xff]  ;;  %v354_v46 = vld [vmem:[#allocation7 + $0x50] sm:$0xff]  ;;  %s1227_s25 = scalar_lea.sflag [#allocation4], %s2079_s0  ;;  %s1811_s26 = scalar_lea.vmem %s1241_s10, 128 }
  0x70   : > { %1467 = vmatpush3.msra.mxu0 %v367_v3  ;;  %1502 = vmatpush3.msra.mxu1 %v367_v3  ;;  %v378_v21 = vrot.slane %v377_v16, 2  ;;  %v384_v22 = vrot.slane %v383_v17, 2  ;;  %v390_v26 = vrot.slane %v389_v18, 2  ;;  %v244_v48 = vld [vmem:[%s2083_s11] sm:$0xff]  ;;  %v245_v50 = vld [vmem:[%s2083_s11 + $0x8] sm:$0xff]  ;;  %v246_v55 = vld [vmem:[%s2083_s11 + $0x10] sm:$0xff]  ;;  %p1812_p6 = scmp.ne.s32.totalorder %s1241_s10, %s1811_s26 }
  0x71   : > { %1468 = vmatprep.subr.mxu0 %v1890_v0  ;;  %1503 = vmatprep.subr.mxu1 %v1890_v0  ;;  %v373_v24 = vadd.f32 %v372_v20, %v371_v15  ;;  %v249_v49 = vsel %vm248_vm4, %v244_v48, 0.0  ;;  %v256_v52 = vsel %vm248_vm4, %v245_v50, 0.0  ;;  %v263_v57 = vsel %vm248_vm4, %v246_v55, 0.0  ;;  %v247_v58 = vld [vmem:[%s2083_s11 + $0x18] sm:$0xff]  ;;  %p2355_p9 = scmp.ne.s32.totalorder %s2347_s6, 0  ;;  %s1893_s9 = smov [#allocation8]  }
  0x72   : > { %1469 = vmatpush3.msra.mxu0 %v366_v4  ;;  %1504 = vmatpush3.msra.mxu1 %v366_v4  ;;  %v379_v25 = vadd.f32 %v378_v21, %v377_v16  ;;  %v385_v28 = vadd.f32 %v384_v22, %v383_v17  ;;  %v391_v32 = vadd.f32 %v390_v26, %v389_v18  ;;  %v250_v51 = vrot.slane %v249_v49, 4  ;;  %s1815_s17 = sshll.u32 %s1893_s9, 4  ;;  %s1816_s17 = int_to_ptr.vmem [resolvable:$false] %s1815_s17 }
  0x73   : > { %1470 = vmatprep.subr.mxu0 %v1890_v0  ;;  %1505 = vmatprep.subr.mxu1 %v1890_v0  ;;  %v374_v29 = vrot.slane %v373_v24, 1  ;;  %v257_v53 = vrot.slane %v256_v52, 4  ;;  %v264_v60 = vrot.slane %v263_v57, 4  ;;  %v270_v61 = vsel %vm248_vm4, %v247_v58, 0.0  ;;  %p1813_p12 = pnand %p1812_p6, %p2355_p9  ;;  %s1817_s16 = scalar_lea.vmem %s1816_s17, 256 }
  0x74   : > { %1471 = vmatpush3.msra.mxu0 %v365_v7  ;;  %1506 = vmatpush3.msra.mxu1 %v365_v7  ;;  %v380_v30 = vrot.slane %v379_v25, 1  ;;  %v386_v34 = vrot.slane %v385_v28, 1  ;;  %v392_v38 = vrot.slane %v391_v32, 1  ;;  %v251_v54 = vadd.f32 %v250_v51, %v249_v49  ;;  %p1818_p0 = scmp.lt.s32.totalorder %s1241_s10, %s1816_s17  ;;  %p1819_p5 = scmp.lt.s32.totalorder %s1817_s16, %s1811_s26 }
  0x75   : > { %1472 = vmatprep.subr.mxu0 %v1890_v0  ;;  %1507 = vmatprep.subr.mxu1 %v1890_v0  ;;  %v375_v35 = vadd.f32 %v374_v29, %v373_v24  ;;  %v258_v56 = vadd.f32 %v257_v53, %v256_v52  ;;  %v271_v63 = vrot.slane %v270_v61, 4  ;;  %v265_v1 = vadd.f32 %v264_v60, %v263_v57  ;;  %p1814_p13 = pneg %p1813_p12 }
  0x76   : > { %1473 = vmatpush3.msra.mxu0 %v364_v14  ;;  %1508 = vmatpush3.msra.mxu1 %v364_v14  ;;  %v381_v36 = vadd.f32 %v380_v30, %v379_v25  ;;  %v387_v40 = vadd.f32 %v386_v34, %v385_v28  ;;  %v393_v43 = vadd.f32 %v392_v38, %v391_v32  ;;  %v252_v59 = vrot.slane %v251_v54, 2  ;;  %p1820_p2 = por %p1819_p5, %p1818_p0 }
  0x77   : > { %1474 = vmatprep.subr.mxu0 %v1890_v0  ;;  %1509 = vmatprep.subr.mxu1 %v1890_v0  ;;  %v259_v62 = vrot.slane %v258_v56, 2  ;;  %v272_v3 = vadd.f32 %v271_v63, %v270_v61  ;;  %v266_v7 = vrot.slane %v265_v1, 2 }
  0x78   : > { %1475 = vmatpush3.msra.mxu0 %v363_v19  ;;  %1510 = vmatpush3.msra.mxu1 %v363_v19  ;;  %v399_v41 = vsel %vm398_vm1, %v381_v36, %v375_v35  ;;  %p1821_p10 = pnand %p1820_p2, %p1814_p13 }
  0x79   : > { %1476 = vmatprep.subr.mxu0 %v1890_v0  ;;  %1511 = vmatprep.subr.mxu1 %v1890_v0  ;;  %v401_v45 = vsel %vm400_vm2, %v387_v40, %v399_v41  ;;  %v260_v2 = vadd.f32 %v259_v62, %v258_v56  ;;  %v273_v11 = vrot.slane %v272_v3, 2  ;;  %v267_v13 = vadd.f32 %v266_v7, %v265_v1 }
  0x7a   : > { %1477 = vmatpush3.msra.mxu0 %v362_v23  ;;  %1512 = vmatpush3.msra.mxu1 %v362_v23  ;;  %v403_v47 = vsel %vm402_vm3, %v393_v43, %v401_v45  ;;  %v334_v7 = vlaneseq }
  0x7b   : > { %1478 = vmatprep.subr.mxu0 %v1890_v0  ;;  %1513 = vmatprep.subr.mxu1 %v1890_v0  ;;  %v261_v10 = vrot.slane %v260_v2, 1  ;;  %v274_v15 = vadd.f32 %v273_v11, %v272_v3  ;;  %v268_v17 = vrot.slane %v267_v13, 1 }
  0x7c   : > { %1479 = vmatpush3.msra.mxu0 %v361_v27  ;;  %1514 = vmatpush3.msra.mxu1 %v361_v27 }
  0x7d   : > { %1480 = vmatprep.subr.mxu0 %v1890_v0  ;;  %1515 = vmatprep.subr.mxu1 %v1890_v0  ;;  %v262_v14 = vadd.f32 %v261_v10, %v260_v2  ;;  %v275_v19 = vrot.slane %v274_v15, 1  ;;  %v269_v21 = vadd.f32 %v268_v17, %v267_v13  ;;  %v2179_v13 = vshrl.u32 %v334_v7, 7 }
  0x7e   : > { %1481 = vmatpush3.msra.mxu0 %v360_v31  ;;  %1516 = vmatpush3.msra.mxu1 %v360_v31 }
  0x7f   : > { %1482 = vmatprep.subr.mxu0 %v1890_v0  ;;  %1517 = vmatprep.subr.mxu1 %v1890_v0  ;;  %v279_v18 = vmul.f32 0.125, %v262_v14  ;;  %v276_v23 = vadd.f32 %v275_v19, %v274_v15  ;;  %v280_v25 = vmul.f32 0.125, %v269_v21  ;;  %v336_v14 = vsub.s32 2, %v2179_v13  ;;  %v2182_v15 = vld [vmem:[#allocation7] sm:$0xff] }
  0x80   : > { %1483 = vmatpush3.msra.mxu0 %v359_v33  ;;  %1518 = vmatpush3.msra.mxu1 %v359_v33 }
  0x81   : > { %1484 = vmatprep.subr.mxu0 %v1890_v0  ;;  %1519 = vmatprep.subr.mxu1 %v1890_v0  ;;  %v2161_v22 = vsub.f32 %v245_v50, %v279_v18  ;;  %v281_v27 = vmul.f32 0.125, %v276_v23  ;;  %v2168_v29 = vsub.f32 %v246_v55, %v280_v25  ;;  %v337_v17 = vrot.slane %v2182_v15, %v336_v14 }
  0x82   : > { %1485 = vmatpush3.msra.mxu0 %v358_v37  ;;  %1520 = vmatpush3.msra.mxu1 %v358_v37 }
  0x83   : > { %1486 = vmatprep.subr.mxu0 %v1890_v0  ;;  %1521 = vmatprep.subr.mxu1 %v1890_v0  ;;  %v287_v26 = vmul.f32 %v2161_v22, %v2161_v22  ;;  %v2171_v32 = vsub.f32 %v247_v58, %v281_v27  ;;  %v288_v34 = vmul.f32 %v2168_v29, %v2168_v29  ;;  %v699_v58 = vld [vmem:[#allocation7 + $0x28] sm:$0xff] }
  0x84   : > { %1487 = vmatpush3.msra.mxu0 %v357_v39  ;;  %1522 = vmatpush3.msra.mxu1 %v357_v39 }
  0x85   : > { %1488 = vmatprep.subr.mxu0 %v1890_v0  ;;  %1523 = vmatprep.subr.mxu1 %v1890_v0  ;;  %v297_v31 = vsel %vm248_vm4, %v287_v26, 0.0  ;;  %v289_v36 = vmul.f32 %v2171_v32, %v2171_v32  ;;  %v304_v38 = vsel %vm248_vm4, %v288_v34, 0.0 }
  0x86   : > { %1489 = vmatpush3.msra.mxu0 %v356_v42  ;;  %1524 = vmatpush3.msra.mxu1 %v356_v42  ;;  %v298_v33 = vrot.slane %v297_v31, 4  ;;  %v305_v40 = vrot.slane %v304_v38, 4 }
  0x87   : > { %1490 = vmatprep.subr.mxu0 %v1890_v0  ;;  %1525 = vmatprep.subr.mxu1 %v1890_v0  ;;  %v311_v41 = vsel %vm248_vm4, %v289_v36, 0.0 }
  0x88   : > { %1491 = vmatpush3.msra.mxu0 %v355_v44  ;;  %1526 = vmatpush3.msra.mxu1 %v355_v44  ;;  %v299_v37 = vadd.f32 %v298_v33, %v297_v31  ;;  %v312_v43 = vrot.slane %v311_v41, 4  ;;  %v306_v45 = vadd.f32 %v305_v40, %v304_v38 }
  0x89   : > { %1492 = vmatprep.subr.mxu0 %v1890_v0  ;;  %1527 = vmatprep.subr.mxu1 %v1890_v0  ;;  %v253_v0 = vadd.f32 %v252_v59, %v251_v54  ;;  %v698_v59 = vld [vmem:[#allocation7 + $0x20] sm:$0xff] }
  0x8a   : > { %1493 = vmatpush3.msra.mxu0 %v354_v46  ;;  %1528 = vmatpush3.msra.mxu1 %v354_v46  ;;  %v300_v42 = vrot.slane %v299_v37, 2  ;;  %v307_v49 = vrot.slane %v306_v45, 2 }
  0x8b   : > { %1495 = vmatmul.mubr.f32.vlgmr.msra.gmra.mxu0 %v403_v47  ;;  %v254_v4 = vrot.slane %v253_v0, 1  ;;  %v313_v47 = vadd.f32 %v312_v43, %v311_v41  ;;  %1532 = vmatprep.subr.mxu0 %v699_v58  ;;  %v2212_v43 = vsub.s32 0, %v2179_v13 }
  0x8c   : > { %v301_v46 = vadd.f32 %v300_v42, %v299_v37  ;;  %v308_v53 = vadd.f32 %v307_v49, %v306_v45  ;;  %1533 = vmatpush3.msra.mxu0 %v699_v58 }
  0x8d   : > { %v255_v12 = vadd.f32 %v254_v4, %v253_v0  ;;  %v314_v51 = vrot.slane %v313_v47, 2  ;;  %v697_v0 = vld [vmem:[#allocation7 + $0x18] sm:$0xff]  ;;  %1534 = vmatprep.subr.mxu0 %v698_v59  ;;  %v696_v4 = vld [vmem:[#allocation7 + $0x10] sm:$0xff] }
  0x8e   : > { %v302_v50 = vrot.slane %v301_v46, 1  ;;  %v309_v57 = vrot.slane %v308_v53, 1  ;;  %1535 = vmatpush3.msra.mxu0 %v698_v59 }
  0x8f   : > { %v278_v16 = vmul.f32 0.125, %v255_v12  ;;  %v315_v55 = vadd.f32 %v314_v51, %v313_v47  ;;  %1536 = vmatprep.subr.mxu0 %v697_v0 }
  0x90   : > { %v303_v54 = vadd.f32 %v302_v50, %v301_v46  ;;  %v310_v62 = vadd.f32 %v309_v57, %v308_v53  ;;  %1537 = vmatpush3.msra.mxu0 %v697_v0 }
  0x91   : > { %v2159_v20 = vsub.f32 %v244_v48, %v278_v16  ;;  %v316_v63 = vrot.slane %v315_v55, 1  ;;  %1538 = vmatprep.subr.mxu0 %v696_v4  ;;  %v344_v16 = vsub.s32 3, %v2179_v13 }
  0x92   : > { %v319_v60 = vmul.f32 0.125, %v303_v54  ;;  %v320_v2 = vmul.f32 0.125, %v310_v62  ;;  %1539 = vmatpush3.msra.mxu0 %v696_v4 }
  0x93   : > { %v286_v24 = vmul.f32 %v2159_v20, %v2159_v20  ;;  %v317_v3 = vadd.f32 %v316_v63, %v315_v55  ;;  %v345_v23 = vrot.slane %v2182_v15, %v344_v16 }
  0x94   : > { %v323_v1 = vadd.f32 1e-05, %v319_v60  ;;  %v324_v10 = vadd.f32 1e-05, %v320_v2 }
  0x95   : > { %v290_v28 = vsel %vm248_vm4, %v286_v24, 0.0  ;;  %v321_v11 = vmul.f32 0.125, %v317_v3 }
  0x96   : > { %v291_v30 = vrot.slane %v290_v28, 4 }
  0x97   : > { %v325_v12 = vadd.f32 1e-05, %v321_v11 }
  0x98   : > { %v292_v35 = vadd.f32 %v291_v30, %v290_v28 }
  0x9a   : > { %v293_v39 = vrot.slane %v292_v35, 2 }
  0x9c   : > { %v294_v44 = vadd.f32 %v293_v39, %v292_v35 }
  0x9e   : > { %v295_v48 = vrot.slane %v294_v44, 1 }
  0xa0   : > { %v296_v52 = vadd.f32 %v295_v48, %v294_v44 }
  0xa2   : > { %v318_v56 = vmul.f32 0.125, %v296_v52 }
  0xa4   : > { %v322_v61 = vadd.f32 1e-05, %v318_v56 }
  0xa6   : > { %1703 = vrsqrt.f32 %v322_v61 }
  0xa7   : > { %1705 = vrsqrt.f32 %v323_v1 }
  0xa8   : > { %1707 = vrsqrt.f32 %v324_v10 }
  0xa9   : > { %1709 = vrsqrt.f32 %v325_v12 }
  0xb3   : > { %v1704_v18 = vpop.eup %1703 }
  0xb4   : > { %v1706_v19 = vpop.eup %1705  ;;  %v330_v21 = vmul.f32 %v1704_v18, %v2159_v20 }
  0xb5   : > { %v331_v24 = vmul.f32 %v1706_v19, %v2161_v22  ;;  %v1708_v26 = vpop.eup %1707 }
  0xb6   : > { %v338_v25 = vmul.f32 %v337_v17, %v330_v21  ;;  %v332_v30 = vmul.f32 %v1708_v26, %v2168_v29  ;;  %v1710_v31 = vpop.eup %1709  ;;  %v1892_v29 = vmov 1966171168  }
  0xb7   : > { %v339_v27 = vmul.f32 %v337_v17, %v331_v24  ;;  %v333_v20 = vmul.f32 %v1710_v31, %v2171_v32  ;;  %v478_v37 = vunpack.c.l.s4 %v1892_v29  ;;  %v912_v31 = vld [vmem:[#allocation7 + $0x140] sm:$0xff] }
  0xb8   : > { %v2189_v28 = vadd.f32 %v345_v23, %v338_v25  ;;  %v340_v34 = vmul.f32 %v337_v17, %v332_v30  ;;  %v913_v30 = vld [vmem:[#allocation7 + $0x148] sm:$0xff]  ;;  %v908_v29 = vld [vmem:[#allocation7 + $0x120] sm:$0xff] }
  0xb9   : > { %v2192_v33 = vadd.f32 %v345_v23, %v339_v27  ;;  %v341_v35 = vmul.f32 %v337_v17, %v333_v20  ;;  %v479_v38 = vunpack.c.0.s8 %v478_v37  ;;  %1560 = vmatprep.subr.mxu0 %v913_v30  ;;  %v910_v20 = vld [vmem:[#allocation7 + $0x130] sm:$0xff]  ;;  %v907_v37 = vld [vmem:[#allocation7 + $0x118] sm:$0xff] }
  0xba   : > { %1540 = vmatprep.mubr.msk.f32.mxu0 %vm248_vm4, %v2189_v28  ;;  %v2199_v22 = vadd.f32 %v345_v23, %v340_v34  ;;  %v911_v34 = vld [vmem:[#allocation7 + $0x138] sm:$0xff] }
  0xbb   : > { %1541 = vmatmul.mubr.msk.f32.vlgmr.msra.gmra.mxu0 %vm248_vm4, %v2192_v33  ;;  %v2203_v36 = vadd.f32 %v345_v23, %v341_v35  ;;  %v2208_v39 = vsub.s32 %v479_v38, %v2179_v13  ;;  %v909_v35 = vld [vmem:[#allocation7 + $0x128] sm:$0xff] }
  0xbc   : > { %1543 = vmatprep.mubr.msk.f32.mxu0 %vm248_vm4, %v2199_v22  ;;  %1561 = vmatpush3.msra.mxu0 %v913_v30  ;;  %v905_v38 = vld [vmem:[#allocation7 + $0x108] sm:$0xff] }
  0xbd   : > { %1562 = vmatprep.subr.mxu0 %v912_v31 }
  0xbe   : > { %1563 = vmatpush3.msra.mxu0 %v912_v31 }
  0xbf   : > { %1544 = vmatmul.mubr.msk.f32.gmra.mxu0 %vm248_vm4, %v2203_v36  ;;  %1564 = vmatprep.subr.mxu0 %v911_v34 }
  0xc0   : > { %1565 = vmatpush3.msra.mxu0 %v911_v34  ;;  %v1086_v34 = vld [vmem:[#allocation7 + $0x1c8] sm:$0xff] }
  0xc1   : > { %1566 = vmatprep.subr.mxu0 %v910_v20 }
  0xc2   : > { %1567 = vmatpush3.msra.mxu0 %v910_v20  ;;  %v1085_v20 = vld [vmem:[#allocation7 + $0x1c0] sm:$0xff] }
  0xc3   : > { %1568 = vmatprep.subr.mxu0 %v909_v35 }
  0xc4   : > { %1569 = vmatpush3.msra.mxu0 %v909_v35  ;;  %v1083_v35 = vld [vmem:[#allocation7 + $0x1b0] sm:$0xff] }
  0xc5   : > { %1570 = vmatprep.subr.mxu0 %v908_v29 }
  0xc6   : > { %1571 = vmatpush3.msra.mxu0 %v908_v29  ;;  %v1082_v29 = vld [vmem:[#allocation7 + $0x1a8] sm:$0xff] }
  0xc7   : > { %1572 = vmatprep.subr.mxu0 %v907_v37 }
  0xc8   : > { %1573 = vmatpush3.msra.mxu0 %v907_v37  ;;  %v1081_v37 = vld [vmem:[#allocation7 + $0x1a0] sm:$0xff] }
 0x14b   : > { %v471_v32 = vpop.f32.mrf.mxu0 }
 0x14c   : > { %v475_v40 = vmul.f32 0.03125, %v471_v32  ;;  %v904_v32 = vld [vmem:[#allocation7 + $0x100] sm:$0xff] }
 0x14d   : > { %v1496_v41 = vpop.f32.mrf.mxu0 }
 0x14e   : > { %v483_v42 = vrot.slane %v475_v40, %v2208_v39  ;;  %v804_v40 = vld [vmem:[#allocation7 + $0x48] sm:$0xff]  ;;  %v903_v41 = vld [vmem:[#allocation7 + $0xf8] sm:$0xff] }
 0x14f   : > { %1546 = vmatprep.subr.mxu1 %v804_v40 }
 0x150   : > { %v484_v44 = vcombine.high %v483_v42, %v483_v42  ;;  %v491_v45 = vrot.slane %v483_v42, %v2208_v39  ;;  %v803_v42 = vld [vmem:[#allocation7 + $0x40] sm:$0xff] }
 0x152   : > { %v498_v46 = vrot.slane %v484_v44, %v2208_v39  ;;  %v499_v47 = vcombine.high %v491_v45, %v491_v45  ;;  %v504_v48 = vrot.slane %v491_v45, %v2212_v43  ;;  %v902_v44 = vld [vmem:[#allocation7 + $0xf0] sm:$0xff]  ;;  %v802_v45 = vld [vmem:[#allocation7 + $0x38] sm:$0xff] }
 0x154   : > { %v500_v49 = vcombine.high %v498_v46, %v498_v46  ;;  %v508_v50 = vrot.slane %v498_v46, %v2212_v43  ;;  %v512_v51 = vrot.slane %v499_v47, %v2212_v43  ;;  %v2220_v52 = vsub.f32 %v2106_v5, %v504_v48  ;;  %v901_v46 = vld [vmem:[#allocation7 + $0xe8] sm:$0xff]  ;;  %v801_v47 = vld [vmem:[#allocation7 + $0x30] sm:$0xff]  ;;  %v900_v48 = vld [vmem:[#allocation7 + $0xe0] sm:$0xff] }
 0x156   : > { %v516_v53 = vrot.slane %v500_v49, %v2212_v43  ;;  %v2224_v54 = vsub.f32 %v2108_v6, %v508_v50  ;;  %v2227_v55 = vsub.f32 %v2111_v8, %v512_v51  ;;  %v525_v56 = vmul.f32 %v2220_v52, %v2220_v52  ;;  %v899_v49 = vld [vmem:[#allocation7 + $0xd8] sm:$0xff]  ;;  %v898_v50 = vld [vmem:[#allocation7 + $0xd0] sm:$0xff] }
 0x158   : > { %v2232_v57 = vsub.f32 %v2113_v9, %v516_v53  ;;  %v526_v58 = vmul.f32 %v2224_v54, %v2224_v54  ;;  %v527_v5 = vmul.f32 %v2227_v55, %v2227_v55  ;;  %v529_v59 = vrot.slane %v525_v56, 4 }
 0x15a   : > { %v530_v60 = vadd.f32 %v529_v59, %v525_v56  ;;  %v535_v61 = vrot.slane %v526_v58, 4  ;;  %v528_v6 = vmul.f32 %v2232_v57, %v2232_v57  ;;  %v541_v8 = vrot.slane %v527_v5, 4 }
 0x15c   : > { %v531_v62 = vrot.slane %v530_v60, 2  ;;  %v536_v63 = vadd.f32 %v535_v61, %v526_v58  ;;  %v542_v0 = vadd.f32 %v541_v8, %v527_v5  ;;  %v547_v1 = vrot.slane %v528_v6, 4 }
 0x15d   : > { %v702_v61 = vsub.s32 4, %v2179_v13  ;;  %v690_v8 = vsub.s32 1, %v2179_v13 }
 0x15e   : > { %v532_v2 = vadd.f32 %v531_v62, %v530_v60  ;;  %v537_v9 = vrot.slane %v536_v63, 2  ;;  %v543_v3 = vrot.slane %v542_v0, 2  ;;  %v548_v4 = vadd.f32 %v547_v1, %v528_v6 }
 0x160   : > { %v533_v7 = vrot.slane %v532_v2, 1  ;;  %v538_v10 = vadd.f32 %v537_v9, %v536_v63  ;;  %v544_v11 = vadd.f32 %v543_v3, %v542_v0  ;;  %v549_v12 = vrot.slane %v548_v4, 2 }
 0x162   : > { %v539_v14 = vrot.slane %v538_v10, 1  ;;  %v545_v16 = vrot.slane %v544_v11, 1  ;;  %v550_v17 = vadd.f32 %v549_v12, %v548_v4  ;;  %v534_v18 = vadd.f32 %v533_v7, %v532_v2 }
 0x163   : > { %v691_v2 = vrot.slane %v2182_v15, %v690_v8 }
 0x164   : > { %v540_v19 = vadd.f32 %v539_v14, %v538_v10  ;;  %v546_v21 = vadd.f32 %v545_v16, %v544_v11  ;;  %v551_v23 = vrot.slane %v550_v17, 1 }
 0x166   : > { %v552_v24 = vadd.f32 %v551_v23, %v550_v17  ;;  %v557_v25 = vsel %vm398_vm1, %v540_v19, %v534_v18 }
 0x167   : > { %v558_v26 = vsel %vm400_vm2, %v546_v21, %v557_v25 }
 0x168   : > { %v559_v27 = vsel %vm402_vm3, %v552_v24, %v558_v26 }
 0x169   : > { %1530 = vmatmul.mubr.f32.vlgmr.msra.gmra.mxu1 %v559_v27 }
 0x16a   : > { %1554 = vmatprep.mubr.msk.f32.mxu1 %vm248_vm4, %v2189_v28  ;;  %v906_v28 = vld [vmem:[#allocation7 + $0x110] sm:$0xff]  ;;  %1547 = vmatpush3.msra.mxu1 %v804_v40  ;;  %v1077_v40 = vld [vmem:[#allocation7 + $0x180] sm:$0xff] }
 0x16b   : > { %1574 = vmatprep.subr.mxu0 %v906_v28  ;;  %1548 = vmatprep.subr.mxu1 %v803_v42 }
 0x16c   : > { %1575 = vmatpush3.msra.mxu0 %v906_v28  ;;  %1549 = vmatpush3.msra.mxu1 %v803_v42  ;;  %v1080_v28 = vld [vmem:[#allocation7 + $0x198] sm:$0xff]  ;;  %v1075_v42 = vld [vmem:[#allocation7 + $0x170] sm:$0xff] }
 0x16d   : > { %1576 = vmatprep.subr.mxu0 %v905_v38  ;;  %1550 = vmatprep.subr.mxu1 %v802_v45 }
 0x16e   : > { %1577 = vmatpush3.msra.mxu0 %v905_v38  ;;  %1551 = vmatpush3.msra.mxu1 %v802_v45  ;;  %v1079_v38 = vld [vmem:[#allocation7 + $0x190] sm:$0xff]  ;;  %v1073_v45 = vld [vmem:[#allocation7 + $0x160] sm:$0xff] }
 0x16f   : > { %1578 = vmatprep.subr.mxu0 %v904_v32  ;;  %1552 = vmatprep.subr.mxu1 %v801_v47 }
 0x170   : > { %1579 = vmatpush3.msra.mxu0 %v904_v32  ;;  %1553 = vmatpush3.msra.mxu1 %v801_v47  ;;  %v1078_v32 = vld [vmem:[#allocation7 + $0x188] sm:$0xff]  ;;  %v1071_v47 = vld [vmem:[#allocation7 + $0x150] sm:$0xff] }
 0x171   : > { %1580 = vmatprep.subr.mxu0 %v903_v41  ;;  %1555 = vmatmul.mubr.msk.f32.vlgmr.msra.gmra.mxu1 %vm248_vm4, %v2192_v33  ;;  %v637_v33 = vrot.slane %v2182_v15, %v2212_v43 }
 0x172   : > { %1581 = vmatpush3.msra.mxu0 %v903_v41  ;;  %1557 = vmatprep.mubr.msk.f32.mxu1 %vm248_vm4, %v2199_v22  ;;  %v1076_v41 = vld [vmem:[#allocation7 + $0x178] sm:$0xff] }
 0x173   : > { %1582 = vmatprep.subr.mxu0 %v902_v44  ;;  %1598 = vmatprep.subr.mxu1 %v1086_v34 }
 0x174   : > { %1583 = vmatpush3.msra.mxu0 %v902_v44  ;;  %1599 = vmatpush3.msra.mxu1 %v1086_v34  ;;  %v1074_v44 = vld [vmem:[#allocation7 + $0x168] sm:$0xff] }
 0x175   : > { %1584 = vmatprep.subr.mxu0 %v901_v46  ;;  %1558 = vmatmul.mubr.msk.f32.gmra.mxu1 %vm248_vm4, %v2203_v36  ;;  %v703_v36 = vrot.slane %v2182_v15, %v702_v61 }
 0x176   : > { %1585 = vmatpush3.msra.mxu0 %v901_v46  ;;  %1600 = vmatprep.subr.mxu1 %v1085_v20  ;;  %v1072_v46 = vld [vmem:[#allocation7 + $0x158] sm:$0xff] }
 0x177   : > { %1586 = vmatprep.subr.mxu0 %v900_v48  ;;  %1601 = vmatpush3.msra.mxu1 %v1085_v20 }
 0x178   : > { %1587 = vmatpush3.msra.mxu0 %v900_v48  ;;  %v807_v48 = vsub.s32 5, %v2179_v13 }
 0x179   : > { %1588 = vmatprep.subr.mxu0 %v899_v49 }
 0x17a   : > { %1589 = vmatpush3.msra.mxu0 %v899_v49 }
 0x17b   : > { %1590 = vmatprep.subr.mxu0 %v898_v50  ;;  %v1542_v5 = vpop.f32.mrf.mxu0 }
 0x17c   : > { %1591 = vmatpush3.msra.mxu0 %v898_v50  ;;  %v788_v23 = vadd.f32 %v1542_v5, %v703_v36  ;;  %v808_v50 = vrot.slane %v2182_v15, %v807_v48 }
 0x17d   : > { %v782_v59 = vpop.f32.mrf.mxu0 }
 0x17e   : > { %v783_v7 = vadd.f32 %v782_v59, %v703_v36 }
 0x17f   : > { %v1545_v62 = vpop.f32.mrf.mxu0 }
 0x181   : > { %v792_v4 = vpop.f32.mrf.mxu0 }
 0x182   : > { %v793_v16 = vadd.f32 %v792_v4, %v703_v36 }
 0x229   : > { %v627_v51 = vpop.f32.mrf.mxu1 }
 0x22a   : > { %v631_v53 = vmul.f32 0.03125, %v627_v51 }
 0x22b   : > { %v1531_v56 = vpop.f32.mrf.mxu1 }
 0x22c   : > { %v632_v58 = vadd.f32 1e-05, %v631_v53 }
 0x22e   : > { %1711 = vrsqrt.f32 %v632_v58 }
 0x231   : > { %v1556_v49 = vpop.f32.mrf.mxu1 }
 0x232   : > { %v881_v53 = vadd.f32 %v1556_v49, %v808_v50 }
 0x233   : > { %v875_v51 = vpop.f32.mrf.mxu1 }
 0x234   : > { %v876_v5 = vadd.f32 %v875_v51, %v808_v50 }
 0x235   : > { %v1559_v56 = vpop.f32.mrf.mxu1 }
 0x23b   : > { %v1712_v60 = vpop.eup %1711 }
 0x23c   : > { %v638_v6 = vmul.f32 %v1712_v60, %v637_v33  ;;  %v891_v33 = vadd.f32 %v1559_v56, %v808_v50  ;;  %v885_v60 = vpop.f32.mrf.mxu1 }
 0x23e   : > { %v646_v22 = vrot.slane %v638_v6, %v2208_v39 }
 0x240   : > { %v647_v63 = vcombine.high %v646_v22, %v646_v22  ;;  %v654_v0 = vrot.slane %v646_v22, %v2208_v39 }
 0x242   : > { %v661_v1 = vrot.slane %v647_v63, %v2208_v39  ;;  %v667_v9 = vrot.slane %v654_v0, %v2212_v43  ;;  %v662_v3 = vcombine.high %v654_v0, %v654_v0 }
 0x244   : > { %v671_v10 = vrot.slane %v661_v1, %v2212_v43  ;;  %v684_v11 = vmul.f32 %v667_v9, %v2220_v52  ;;  %v663_v12 = vcombine.high %v661_v1, %v661_v1  ;;  %v675_v14 = vrot.slane %v662_v3, %v2212_v43 }
 0x246   : > { %v685_v17 = vmul.f32 %v671_v10, %v2224_v54  ;;  %v2265_v18 = vadd.f32 %v691_v2, %v684_v11  ;;  %v679_v19 = vrot.slane %v663_v12, %v2212_v43  ;;  %v686_v21 = vmul.f32 %v675_v14, %v2227_v55 }
 0x247   : > { %v798_v54 = vadd.f32 %v1545_v62, %v703_v36  ;;  %v886_v36 = vadd.f32 %v885_v60, %v808_v50 }
 0x248   : > { %v2269_v24 = vadd.f32 %v691_v2, %v685_v17  ;;  %v894_v25 = vmul.f32 %v783_v7, %v2265_v18  ;;  %v687_v26 = vmul.f32 %v679_v19, %v2232_v57  ;;  %v2273_v52 = vadd.f32 %v691_v2, %v686_v21  ;;  %v1084_v57 = vld [vmem:[#allocation7 + $0x1b8] sm:$0xff] }
 0x249   : > { %1602 = vmatprep.subr.mxu1 %v1084_v57 }
 0x24a   : > { %v895_v27 = vmul.f32 %v788_v23, %v2269_v24  ;;  %v2276_v30 = vadd.f32 %v691_v2, %v687_v26  ;;  %v896_v31 = vmul.f32 %v793_v16, %v2273_v52  ;;  %1592 = vmatprep.mubr.f32.mxu0 %v894_v25  ;;  %1603 = vmatpush3.msra.mxu1 %v1084_v57 }
 0x24b   : > { %1604 = vmatprep.subr.mxu1 %v1083_v35 }
 0x24c   : > { %1593 = vmatmul.mubr.f32.vlgmr.msra.gmra.mxu0 %v895_v27  ;;  %v897_v55 = vmul.f32 %v798_v54, %v2276_v30  ;;  %1605 = vmatpush3.msra.mxu1 %v1083_v35 }
 0x24d   : > { %1595 = vmatprep.mubr.f32.mxu0 %v896_v31  ;;  %1606 = vmatprep.subr.mxu1 %v1082_v29 }
 0x24e   : > { %1607 = vmatpush3.msra.mxu1 %v1082_v29 }
 0x24f   : > { %1608 = vmatprep.subr.mxu1 %v1081_v37 }
 0x250   : > { %1596 = vmatmul.mubr.f32.gmra.mxu0 %v897_v55  ;;  %1609 = vmatpush3.msra.mxu1 %v1081_v37 }
 0x251   : > { %1610 = vmatprep.subr.mxu1 %v1080_v28 }
 0x252   : > { %1611 = vmatpush3.msra.mxu1 %v1080_v28 }
 0x253   : > { %1612 = vmatprep.subr.mxu1 %v1079_v38 }
 0x254   : > { %1613 = vmatpush3.msra.mxu1 %v1079_v38 }
 0x255   : > { %1614 = vmatprep.subr.mxu1 %v1078_v32 }
 0x256   : > { %1615 = vmatpush3.msra.mxu1 %v1078_v32 }
 0x257   : > { %1616 = vmatprep.subr.mxu1 %v1077_v40 }
 0x258   : > { %1617 = vmatpush3.msra.mxu1 %v1077_v40 }
 0x259   : > { %1618 = vmatprep.subr.mxu1 %v1076_v41 }
 0x25a   : > { %1619 = vmatpush3.msra.mxu1 %v1076_v41 }
 0x25b   : > { %1620 = vmatprep.subr.mxu1 %v1075_v42 }
 0x25c   : > { %1621 = vmatpush3.msra.mxu1 %v1075_v42 }
 0x25d   : > { %1622 = vmatprep.subr.mxu1 %v1074_v44 }
 0x25e   : > { %1623 = vmatpush3.msra.mxu1 %v1074_v44 }
 0x25f   : > { %1624 = vmatprep.subr.mxu1 %v1073_v45 }
 0x260   : > { %1625 = vmatpush3.msra.mxu1 %v1073_v45 }
 0x261   : > { %1626 = vmatprep.subr.mxu1 %v1072_v46 }
 0x262   : > { %1627 = vmatpush3.msra.mxu1 %v1072_v46 }
 0x263   : > { %1628 = vmatprep.subr.mxu1 %v1071_v47 }
 0x264   : > { %1629 = vmatpush3.msra.mxu1 %v1071_v47 }
 0x30c   : > { %v1594_v58 = vpop.f32.mrf.mxu0 }
 0x30d   : > { %v986_v59 = vadd.f32 %v1594_v58, %v881_v53 }
 0x30e   : > { %v980_v61 = vpop.f32.mrf.mxu0 }
 0x30f   : > { %v1005_v6 = vrot.slane %v986_v59, 4  ;;  %v981_v22 = vadd.f32 %v980_v61, %v876_v5 }
 0x310   : > { %v1597_v8 = vpop.f32.mrf.mxu0 }
 0x311   : > { %v1006_v62 = vmax.f32 %v986_v59, %v1005_v6  ;;  %v999_v63 = vrot.slane %v981_v22, 4  ;;  %v996_v0 = vadd.f32 %v1597_v8, %v891_v33 }
 0x312   : > { %v990_v13 = vpop.f32.mrf.mxu0 }
 0x313   : > { %v1007_v1 = vrot.slane %v1006_v62, 2  ;;  %v1000_v2 = vmax.f32 %v981_v22, %v999_v63  ;;  %v1017_v15 = vrot.slane %v996_v0, 4  ;;  %v991_v9 = vadd.f32 %v990_v13, %v886_v36 }
 0x315   : > { %v1008_v3 = vmax.f32 %v1006_v62, %v1007_v1  ;;  %v1001_v4 = vrot.slane %v1000_v2, 2  ;;  %v1018_v7 = vmax.f32 %v996_v0, %v1017_v15  ;;  %v1011_v10 = vrot.slane %v991_v9, 4 }
 0x317   : > { %v1009_v11 = vrot.slane %v1008_v3, 1  ;;  %v1002_v12 = vmax.f32 %v1000_v2, %v1001_v4  ;;  %v1019_v14 = vrot.slane %v1018_v7, 2  ;;  %v1012_v16 = vmax.f32 %v991_v9, %v1011_v10 }
 0x319   : > { %v1010_v17 = vmax.f32 %v1008_v3, %v1009_v11  ;;  %v1003_v19 = vrot.slane %v1002_v12, 1  ;;  %v1020_v21 = vmax.f32 %v1018_v7, %v1019_v14  ;;  %v1013_v23 = vrot.slane %v1012_v16, 2 }
 0x31b   : > { %v1024_v25 = vsub.f32 %v986_v59, %v1010_v17  ;;  %v1004_v26 = vmax.f32 %v1002_v12, %v1003_v19  ;;  %v1021_v27 = vrot.slane %v1020_v21, 1  ;;  %v1014_v54 = vmax.f32 %v1012_v16, %v1013_v23  ;;  %v1365_v17 = vld.sshfl [vmem:[#allocation7 + $0x8] sm:$0xff pattern:$0x75316420] }
 0x31c   : > { %v1181_v19 = vcombine.high %v1365_v17, %v1365_v17 }
 0x31d   : > { %v1029_v31 = vmul.f32 1.442695, %v1024_v25  ;;  %v1023_v55 = vsub.f32 %v981_v22, %v1004_v26  ;;  %v1022_v34 = vmax.f32 %v1020_v21, %v1021_v27  ;;  %v1015_v20 = vrot.slane %v1014_v54, 1 }
 0x31e   : > { %v1188_v21 = vrot.slane %v1365_v17, %v2208_v39 }
 0x31f   : > { %1713 = vpow2.f32 %v1029_v31  ;;  %v1027_v57 = vmul.f32 1.442695, %v1023_v55  ;;  %v1026_v35 = vsub.f32 %v996_v0, %v1022_v34  ;;  %v1016_v29 = vmax.f32 %v1014_v54, %v1015_v20 }
 0x320   : > { %v1196_v23 = vcombine.high %v1188_v21, %v1188_v21 }
 0x321   : > { %1715 = vpow2.f32 %v1027_v57  ;;  %v1033_v37 = vmul.f32 1.442695, %v1026_v35  ;;  %v1025_v28 = vsub.f32 %v991_v9, %v1016_v29 }
 0x323   : > { %1717 = vpow2.f32 %v1033_v37  ;;  %v1031_v38 = vmul.f32 1.442695, %v1025_v28 }
 0x325   : > { %1719 = vpow2.f32 %v1031_v38 }
 0x32c   : > { %v1714_v32 = vpop.eup %1713 }
 0x32d   : > { %v1041_v40 = vrot.slane %v1714_v32, 4 }
 0x32e   : > { %v1716_v41 = vpop.eup %1715 }
 0x32f   : > { %v1035_v42 = vrot.slane %v1716_v41, 4  ;;  %v1042_v44 = vadd.f32 %v1714_v32, %v1041_v40 }
 0x330   : > { %v1718_v45 = vpop.eup %1717 }
 0x331   : > { %v1036_v46 = vadd.f32 %v1716_v41, %v1035_v42  ;;  %v1043_v47 = vrot.slane %v1042_v44, 2  ;;  %v1053_v48 = vrot.slane %v1718_v45, 4 }
 0x332   : > { %v1720_v49 = vpop.eup %1719 }
 0x333   : > { %v1037_v50 = vrot.slane %v1036_v46, 2  ;;  %v1044_v51 = vadd.f32 %v1043_v47, %v1042_v44  ;;  %v1047_v53 = vrot.slane %v1720_v49, 4  ;;  %v1054_v56 = vadd.f32 %v1718_v45, %v1053_v48 }
 0x335   : > { %v1038_v58 = vadd.f32 %v1037_v50, %v1036_v46  ;;  %v1045_v5 = vrot.slane %v1044_v51, 1  ;;  %v1048_v33 = vadd.f32 %v1720_v49, %v1047_v53  ;;  %v1055_v59 = vrot.slane %v1054_v56, 2 }
 0x337   : > { %v1039_v60 = vrot.slane %v1038_v58, 1  ;;  %v1046_v61 = vadd.f32 %v1045_v5, %v1044_v51  ;;  %v1049_v6 = vrot.slane %v1048_v33, 2  ;;  %v1056_v22 = vadd.f32 %v1055_v59, %v1054_v56 }
 0x339   : > { %v1040_v8 = vadd.f32 %v1039_v60, %v1038_v58  ;;  %1721 = vrcp.f32 %v1046_v61  ;;  %v1050_v62 = vadd.f32 %v1049_v6, %v1048_v33  ;;  %v1057_v36 = vrot.slane %v1056_v22, 1 }
 0x33b   : > { %1723 = vrcp.f32 %v1040_v8  ;;  %v1051_v63 = vrot.slane %v1050_v62, 1  ;;  %v1058_v0 = vadd.f32 %v1057_v36, %v1056_v22 }
 0x33d   : > { %v1052_v13 = vadd.f32 %v1051_v63, %v1050_v62  ;;  %1725 = vrcp.f32 %v1058_v0 }
 0x33f   : > { %1727 = vrcp.f32 %v1052_v13 }
 0x346   : > { %v1722_v1 = vpop.eup %1721 }
 0x347   : > { %v1064_v15 = vmul.f32 %v1722_v1, %v1714_v32 }
 0x348   : > { %v1724_v2 = vpop.eup %1723 }
 0x349   : > { %v1063_v9 = vmul.f32 %v1724_v2, %v1716_v41  ;;  %v1068_v10 = vmul.f32 %v1064_v15, %v2269_v24  ;;  %v1201_v24 = vrot.slane %v1188_v21, %v2212_v43 }
 0x34a   : > { %v1726_v3 = vpop.eup %1725 }
 0x34b   : > { %v1067_v4 = vmul.f32 %v1063_v9, %v2265_v18  ;;  %v1066_v11 = vmul.f32 %v1726_v3, %v1718_v45  ;;  %v1195_v18 = vrot.slane %v1181_v19, %v2208_v39 }
 0x34c   : > { %v1728_v7 = vpop.eup %1727 }
 0x34d   : > { %1630 = vmatprep.mubr.f32.mxu1 %v1067_v4  ;;  %v1065_v12 = vmul.f32 %v1728_v7, %v1720_v49  ;;  %v1070_v16 = vmul.f32 %v1066_v11, %v2276_v30  ;;  %v1205_v26 = vrot.slane %v1195_v18, %v2212_v43  ;;  %v1197_v27 = vcombine.high %v1195_v18, %v1195_v18 }
 0x34e   : > { %1631 = vmatmul.mubr.f32.vlgmr.msra.gmra.mxu1 %v1068_v10  ;;  %v1209_v30 = vrot.slane %v1196_v23, %v2212_v43 }
 0x34f   : > { %v1069_v14 = vmul.f32 %v1065_v12, %v2273_v52  ;;  %v1213_v34 = vrot.slane %v1197_v27, %v2212_v43 }
 0x351   : > { %1633 = vmatprep.mubr.f32.mxu1 %v1069_v14 }
 0x352   : > { %1634 = vmatmul.mubr.f32.gmra.mxu1 %v1070_v16 }
 0x40e   : > { %v1632_v25 = vpop.f32.mrf.mxu1 }
 0x40f   : > { %v1219_v55 = vmul.f32 %v1632_v25, %v1205_v26 }
 0x410   : > { %v1153_v54 = vpop.f32.mrf.mxu1 }
 0x411   : > { %v1218_v52 = vmul.f32 %v1201_v24, %v1153_v54 }
 0x412   : > { %v1635_v31 = vpop.f32.mrf.mxu1 }
 0x413   : > { %v1222_v20 = vadd.f32 %v1219_v55, %v1218_v52  ;;  %v1221_v35 = vmul.f32 %v1635_v31, %v1213_v34 }
 0x414   : > { %v1163_v39 = vpop.f32.mrf.mxu1 }
 0x415   : > { %v1220_v57 = vmul.f32 %v1209_v30, %v1163_v39 }
 0x417   : > { %v1223_v29 = vadd.f32 %v1222_v20, %v1220_v57 }
 0x419   : > { %v1224_v37 = vadd.f32 %v1223_v29, %v1221_v35 }
 0x41b   : > { %1225 = vst [vmem:[%s242_s29] sm:$0xff] %v1224_v37 }
 0x41c   : > { %1824 = shalt.err (!%p1821_p10)
}
 0x41d   : > { %s1825_s22 = scalar_lea.hbm %s1238_s8, 128  ;;  %s1829_s2 = scalar_lea.hbm %s2331_s3, 256 }
 0x41e   : > { %p1826_p1 = scmp.ne.s32.totalorder %s1238_s8, %s1825_s22  ;;  %p1830_p7 = scmp.lt.s32.totalorder %s1238_s8, %s2331_s3 }
 0x41f   : > { %p1831_p8 = scmp.lt.s32.totalorder %s1829_s2, %s1825_s22 }
 0x420   : > { %p1827_p4 = pnand %p1826_p1, %p2355_p9 }
 0x421   : > { %p1832_p11 = por %p1831_p8, %p1830_p7 }
 0x422   : > { %p1828_p3 = pneg %p1827_p4 }
 0x424   : > { %p1833_p6 = pnand %p1832_p11, %p1828_p3 }
 0x426   : > { %1836 = shalt.err (!%p1833_p6)
}
 0x427   : > { %1644 = dma.vmem_to_hbm [thread:$0]  (%p2355_p9), %s1241_s10, 128, %s1238_s8, %s1227_s25  }
 0x428 PF: > { %s1252_s23 = sand.u32 1, %s1871_s12   ;;  %p2356_p12 = scmp.ne.s32.totalorder %s2342_s19, 0 }
 0x429   : > { %p2357_p13 = scmp.ge.s32.totalorder %s1883_s15, 2  ;;  %s1253_s20 = scalar_lea.sflag [#allocation4], %s1252_s23 }
 0x42b   : > { %p1658_p0 = pnand %p2357_p13, %p2356_p12 }
 0x42d   : > { %p1659_p5 = pneg %p1658_p0 }
 0x42f   : > { %1866 = dma.done.wait (%p1659_p5), %s1253_s20, 128  }
 0x430   : > { %1868 = vsyncadd (%p1659_p5), %s1253_s20, 4294967168  ;;  %p19_p2 = scmp.ge.s32.totalorder %s1968_s24, 4   ;;  %s2358_s12 = smov %s1875_s13 }
 0x431   : > { %s2359_s13 = smov %s1879_s14  ;;  %s2360_s14 = smov %s1988_s5 }
 0x432   : > { %s2361_s15 = smov %s1968_s24  ;;  %21 = sbr.rel (!%p19_p2) target bundleno = 10 (0xa), region = 94 }
 0x437   :  { %1258 = vsyncpa [#allocation3], 1 }
 0x438   :  { %1260 = vsyncpa [#allocation3 + $0x1], 1 }
 0x439   :  { %1261 = vsyncpa [#allocation6], 1 }
 0x43a   :  { %1263 = vsyncpa [#allocation6 + $0x1], 1 }
 0x43b   :  { %1264 = vsyncpa [#allocation4], 1 }
 0x43c   :  { %1266 = vsyncpa [#allocation4 + $0x1], 1 }

</bundles_post_ra>
